<compile_context>
chip_gen: v7x
topology: tpu7x:2x2x1
jax: 0.10.0
libtpu: 0.0.40
codegen_flags: <defaults>
</compile_context>

<pallas_src>
import functools

import jax
import jax.numpy as jnp
import numpy as np
from jax.experimental import pallas as pl
from jax.experimental.pallas import tpu as pltpu


# ----------------------------- Pallas kernel ------------------------------ #
def _generator_kernel(num_layers,
                      tok_ref,        # (B, 1)        int32 token ids
                      emb_ref,        # (V, E)        bf16 embedding table
                      h0_ref,         # (L, B, H)     f32 previous hidden state
                      wcat0_ref,      # (E+H, H)      bf16 [W_ih0.T ; W_hh0.T]
                      *rest):
    # rest = ([wcat_rest_ref (L-1, 2H, H)], bias_ref (L,1,H), wout_ref (H,Vp),
    #         bout_ref (1,Vp), logits_ref (B,Vp), h_out_ref (L,B,H))
    if num_layers > 1:
        wcat_rest_ref, bias_ref, wout_ref, bout_ref, logits_ref, h_out_ref = rest
    else:
        bias_ref, wout_ref, bout_ref, logits_ref, h_out_ref = rest
        wcat_rest_ref = None

    B = tok_ref.shape[0]
    V = emb_ref.shape[0]

    # In-kernel embedding gather: one-hot matmul on the MXU (V, E are tiny).
    vocab_ids = jax.lax.broadcasted_iota(jnp.int32, (B, V), 1)
    onehot = (tok_ref[...] == vocab_ids).astype(emb_ref.dtype)          # (B, V)
    x = jnp.dot(onehot, emb_ref[...],
                preferred_element_type=jnp.float32).astype(jnp.bfloat16)  # (B, E)

    # Static (unrolled) layer loop; fused input/recurrent matmul per layer.
    for l in range(num_layers):
        h_prev = h0_ref[l].astype(jnp.bfloat16)                         # (B, H)
        xh = jnp.concatenate([x, h_prev], axis=-1)                      # (B, E+H)/(B, 2H)
        w = wcat0_ref[...] if l == 0 else wcat_rest_ref[l - 1]
        h_new = jnp.tanh(
            jnp.dot(xh, w, preferred_element_type=jnp.float32) + bias_ref[l])
        h_out_ref[l] = h_new                                            # f32
        x = h_new.astype(jnp.bfloat16)

    # Lane-dense (padded-to-128) output projection.
    logits_ref[...] = (jnp.dot(x, wout_ref[...],
                               preferred_element_type=jnp.float32)
                       + bout_ref[...])


# ----------------------- one-time parameter preparation -------------------- #
def prepare_params(params):
    """Hoisted out of the hot path: transpose/stack/cast/pad weights ONCE."""
    num_layers = len(params["w_ih"])
    H = params["w_hh"][0].shape[0]
    V, _E = params["embedding"].shape
    V_pad = ((V + 127) // 128) * 128

    prep = {
        "embedding": params["embedding"].astype(jnp.bfloat16),               # (V, E)
        "wcat0": jnp.concatenate(
            [params["w_ih"][0].T, params["w_hh"][0].T], axis=0
        ).astype(jnp.bfloat16),                                              # (E+H, H)
        "bias": jnp.stack(
            [(params["b_ih"][l] + params["b_hh"][l]).reshape(1, H)
             for l in range(num_layers)]).astype(jnp.float32),               # (L, 1, H)
        "w_out_pad": jnp.zeros((H, V_pad), jnp.bfloat16)
                        .at[:, :V].set(params["w_out"].T.astype(jnp.bfloat16)),
        "b_out_pad": jnp.zeros((1, V_pad), jnp.float32)
                        .at[:, :V].set(params["b_out"]),
    }
    if num_layers > 1:
        prep["wcat_rest"] = jnp.stack([
            jnp.concatenate([params["w_ih"][l].T, params["w_hh"][l].T], axis=0)
            for l in range(1, num_layers)]).astype(jnp.bfloat16)             # (L-1, 2H, H)
    return prep


# ------------------------------ JAX wrapper -------------------------------- #
def generator_forward(tokens, h, prep):
    """tokens: (B,) int32, h: (L, B, H) f32 -> (logits (B,V), h_new (L,B,H))."""
    num_layers, B, H = h.shape
    V = prep["embedding"].shape[0]
    V_pad = prep["w_out_pad"].shape[1]

    vmem = pl.BlockSpec(memory_space=pltpu.MemorySpace.VMEM)
    operands = [tokens.reshape(B, 1).astype(jnp.int32),
                prep["embedding"], h, prep["wcat0"]]
    if num_layers > 1:
        operands.append(prep["wcat_rest"])
    operands += [prep["bias"], prep["w_out_pad"], prep["b_out_pad"]]

    logits_pad, h_new = pl.pallas_call(
        functools.partial(_generator_kernel, num_layers),
        out_shape=(jax.ShapeDtypeStruct((B, V_pad), jnp.float32),
                   jax.ShapeDtypeStruct((num_layers, B, H), jnp.float32)),
        in_specs=[vmem] * len(operands),
        out_specs=(vmem, vmem),
    )(*operands)
    return logits_pad[:, :V], h_new


# --------------------------- pure-JAX reference ---------------------------- #
def generator_forward_ref(tokens, h, params):
    num_layers = h.shape[0]
    x = params["embedding"][tokens]
    new_h = []
    for l in range(num_layers):
        hn = jnp.tanh(x @ params["w_ih"][l].T + params["b_ih"][l]
                      + h[l] @ params["w_hh"][l].T + params["b_hh"][l])
        new_h.append(hn)
        x = hn
    logits = x @ params["w_out"].T + params["b_out"]
    return logits, jnp.stack(new_h)


# ------------------------------- param init -------------------------------- #
def init_params(key, voc_size, num_layers, embed_dim, hidden_dim):
    keys = jax.random.split(key, 4 + 4 * num_layers)
    params = {
        "embedding": 0.1 * jax.random.normal(keys[0], (voc_size, embed_dim), jnp.float32),
        "w_out": 0.1 * jax.random.normal(keys[1], (voc_size, hidden_dim), jnp.float32),
        "b_out": 0.1 * jax.random.normal(keys[2], (voc_size,), jnp.float32),
        "w_ih": [], "w_hh": [], "b_ih": [], "b_hh": [],
    }
    for l in range(num_layers):
        in_dim = embed_dim if l == 0 else hidden_dim
        k = keys[4 + 4 * l: 8 + 4 * l]
        params["w_ih"].append(0.1 * jax.random.normal(k[0], (hidden_dim, in_dim), jnp.float32))
        params["w_hh"].append(0.1 * jax.random.normal(k[1], (hidden_dim, hidden_dim), jnp.float32))
        params["b_ih"].append(0.1 * jax.random.normal(k[2], (hidden_dim,), jnp.float32))
        params["b_hh"].append(0.1 * jax.random.normal(k[3], (hidden_dim,), jnp.float32))
    return params


# ----------------------------------- main ----------------------------------- #
if __name__ == "__main__":
    B = 8
    VOC_SIZE = 24
    NUM_LAYERS = 2
    EMBED_DIM = 32
    HIDDEN_DIM = 32

    key = jax.random.PRNGKey(0)
    pkey, tkey = jax.random.split(key)
    params = init_params(pkey, VOC_SIZE, NUM_LAYERS, EMBED_DIM, HIDDEN_DIM)

    # One-time weight preparation (out of the hot path).
    prep = jax.tree_util.tree_map(jax.block_until_ready, prepare_params(params))

    tokens = jax.random.randint(tkey, (B,), 0, VOC_SIZE, dtype=jnp.int32)
    h0 = jnp.zeros((NUM_LAYERS, B, HIDDEN_DIM), jnp.float32)   # Generator.init_h

    fwd = jax.jit(generator_forward)
    logits, h_new = fwd(tokens, h0, prep)
    logits = jax.block_until_ready(logits)
    h_new = jax.block_until_ready(h_new)

    logits_ref, h_ref = generator_forward_ref(tokens, h0, params)
    # bf16 operands with f32 accumulation -> looser tolerance than pure f32.
    np.testing.assert_allclose(np.asarray(logits), np.asarray(logits_ref),
                               rtol=3e-2, atol=3e-2)
    np.testing.assert_allclose(np.asarray(h_new), np.asarray(h_ref),
                               rtol=3e-2, atol=3e-2)

    print("KERNEL_OK")
</pallas_src>

<mosaic_0001>
module attributes {stable_mosaic.version = 11 : i64} {
  func.func @_generator_kernel(%arg0: memref<8x1xi32, #tpu.memory_space<vmem>>, %arg1: memref<24x32xbf16, #tpu.memory_space<vmem>>, %arg2: memref<2x8x32xf32, #tpu.memory_space<vmem>>, %arg3: memref<64x32xbf16, #tpu.memory_space<vmem>>, %arg4: memref<1x64x32xbf16, #tpu.memory_space<vmem>>, %arg5: memref<2x1x32xf32, #tpu.memory_space<vmem>>, %arg6: memref<32x128xbf16, #tpu.memory_space<vmem>>, %arg7: memref<1x128xf32, #tpu.memory_space<vmem>>, %arg8: memref<8x128xf32, #tpu.memory_space<vmem>>, %arg9: memref<2x8x32xf32, #tpu.memory_space<vmem>>) attributes {dimension_semantics = [], scalar_prefetch = 0 : i64, scratch_operands = 0 : i64, tpu.core_type = #tpu.core_type<tc>} {
    %0 = tpu.iota {dimensions = array<i32: 1>} : vector<8x24xi32>
    %c0 = arith.constant 0 : index
    %c0_0 = arith.constant 0 : index
    %1 = vector.load %arg0[%c0, %c0_0] : memref<8x1xi32, #tpu.memory_space<vmem>>, vector<8x1xi32>
    %2 = vector.broadcast %1 : vector<8x1xi32> to vector<8x24xi32>
    %3 = arith.cmpi eq, %2, %0 : vector<8x24xi32>
    %4 = arith.extui %3 : vector<8x24xi1> to vector<8x24xi32>
    %5 = arith.sitofp %4 : vector<8x24xi32> to vector<8x24xf32>
    %6 = arith.truncf %5 : vector<8x24xf32> to vector<8x24xbf16>
    %c0_1 = arith.constant 0 : index
    %c0_2 = arith.constant 0 : index
    %7 = vector.load %arg1[%c0_1, %c0_2] : memref<24x32xbf16, #tpu.memory_space<vmem>>, vector<24x32xbf16>
    %cst = arith.constant dense<0.000000e+00> : vector<8x32xf32>
    %8 = tpu.matmul %6, %7, %cst {dimension_numbers = #tpu.dot_dimension_numbers<[1], [0], [0], [1], [0, 0, 1, 1], [], []>} : vector<8x24xbf16>, vector<24x32xbf16>, vector<8x32xf32> -> vector<8x32xf32>
    %9 = arith.truncf %8 : vector<8x32xf32> to vector<8x32xbf16>
    %c0_3 = arith.constant 0 : index
    %c0_4 = arith.constant 0 : index
    %c0_5 = arith.constant 0 : index
    %10 = vector.load %arg2[%c0_3, %c0_4, %c0_5] : memref<2x8x32xf32, #tpu.memory_space<vmem>>, vector<1x8x32xf32>
    %11 = vector.shape_cast %10 : vector<1x8x32xf32> to vector<8x32xf32>
    %12 = arith.truncf %11 : vector<8x32xf32> to vector<8x32xbf16>
    %13 = tpu.concatenate %9, %12 in 1 : vector<8x32xbf16>, vector<8x32xbf16> -> vector<8x64xbf16>
    %c0_6 = arith.constant 0 : index
    %c0_7 = arith.constant 0 : index
    %14 = vector.load %arg3[%c0_6, %c0_7] : memref<64x32xbf16, #tpu.memory_space<vmem>>, vector<64x32xbf16>
    %cst_8 = arith.constant dense<0.000000e+00> : vector<8x32xf32>
    %15 = tpu.matmul %13, %14, %cst_8 {dimension_numbers = #tpu.dot_dimension_numbers<[1], [0], [0], [1], [0, 0, 1, 1], [], []>} : vector<8x64xbf16>, vector<64x32xbf16>, vector<8x32xf32> -> vector<8x32xf32>
    %c0_9 = arith.constant 0 : index
    %c0_10 = arith.constant 0 : index
    %c0_11 = arith.constant 0 : index
    %16 = vector.load %arg5[%c0_9, %c0_10, %c0_11] : memref<2x1x32xf32, #tpu.memory_space<vmem>>, vector<1x1x32xf32>
    %17 = vector.shape_cast %16 : vector<1x1x32xf32> to vector<1x32xf32>
    %18 = vector.broadcast %17 : vector<1x32xf32> to vector<8x32xf32>
    %19 = arith.addf %15, %18 : vector<8x32xf32>
    %20 = math.tanh %19 : vector<8x32xf32>
    %c0_12 = arith.constant 0 : index
    %c0_13 = arith.constant 0 : index
    %c0_14 = arith.constant 0 : index
    %21 = vector.load %arg9[%c0_12, %c0_13, %c0_14] : memref<2x8x32xf32, #tpu.memory_space<vmem>>, vector<1x8x32xf32>
    %22 = vector.shape_cast %21 : vector<1x8x32xf32> to vector<8x32xf32>
    %23 = vector.shape_cast %20 : vector<8x32xf32> to vector<1x8x32xf32>
    tpu.vector_store %arg9[%c0_12, %c0_13, %c0_14], %23 {strides = array<i32>} : memref<2x8x32xf32, #tpu.memory_space<vmem>>, vector<1x8x32xf32>,
    %24 = arith.truncf %20 : vector<8x32xf32> to vector<8x32xbf16>
    %c1 = arith.constant 1 : index
    %c0_15 = arith.constant 0 : index
    %c0_16 = arith.constant 0 : index
    %25 = vector.load %arg2[%c1, %c0_15, %c0_16] : memref<2x8x32xf32, #tpu.memory_space<vmem>>, vector<1x8x32xf32>
    %26 = vector.shape_cast %25 : vector<1x8x32xf32> to vector<8x32xf32>
    %27 = arith.truncf %26 : vector<8x32xf32> to vector<8x32xbf16>
    %28 = tpu.concatenate %24, %27 in 1 : vector<8x32xbf16>, vector<8x32xbf16> -> vector<8x64xbf16>
    %c0_17 = arith.constant 0 : index
    %c0_18 = arith.constant 0 : index
    %c0_19 = arith.constant 0 : index
    %29 = vector.load %arg4[%c0_17, %c0_18, %c0_19] : memref<1x64x32xbf16, #tpu.memory_space<vmem>>, vector<1x64x32xbf16>
    %30 = vector.shape_cast %29 : vector<1x64x32xbf16> to vector<64x32xbf16>
    %cst_20 = arith.constant dense<0.000000e+00> : vector<8x32xf32>
    %31 = tpu.matmul %28, %30, %cst_20 {dimension_numbers = #tpu.dot_dimension_numbers<[1], [0], [0], [1], [0, 0, 1, 1], [], []>} : vector<8x64xbf16>, vector<64x32xbf16>, vector<8x32xf32> -> vector<8x32xf32>
    %c1_21 = arith.constant 1 : index
    %c0_22 = arith.constant 0 : index
    %c0_23 = arith.constant 0 : index
    %32 = vector.load %arg5[%c1_21, %c0_22, %c0_23] : memref<2x1x32xf32, #tpu.memory_space<vmem>>, vector<1x1x32xf32>
    %33 = vector.shape_cast %32 : vector<1x1x32xf32> to vector<1x32xf32>
    %34 = vector.broadcast %33 : vector<1x32xf32> to vector<8x32xf32>
    %35 = arith.addf %31, %34 : vector<8x32xf32>
    %36 = math.tanh %35 : vector<8x32xf32>
    %c1_24 = arith.constant 1 : index
    %c0_25 = arith.constant 0 : index
    %c0_26 = arith.constant 0 : index
    %37 = vector.load %arg9[%c1_24, %c0_25, %c0_26] : memref<2x8x32xf32, #tpu.memory_space<vmem>>, vector<1x8x32xf32>
    %38 = vector.shape_cast %37 : vector<1x8x32xf32> to vector<8x32xf32>
    %39 = vector.shape_cast %36 : vector<8x32xf32> to vector<1x8x32xf32>
    tpu.vector_store %arg9[%c1_24, %c0_25, %c0_26], %39 {strides = array<i32>} : memref<2x8x32xf32, #tpu.memory_space<vmem>>, vector<1x8x32xf32>,
    %40 = arith.truncf %36 : vector<8x32xf32> to vector<8x32xbf16>
    %c0_27 = arith.constant 0 : index
    %c0_28 = arith.constant 0 : index
    %41 = vector.load %arg6[%c0_27, %c0_28] : memref<32x128xbf16, #tpu.memory_space<vmem>>, vector<32x128xbf16>
    %cst_29 = arith.constant dense<0.000000e+00> : vector<8x128xf32>
    %42 = tpu.matmul %40, %41, %cst_29 {dimension_numbers = #tpu.dot_dimension_numbers<[1], [0], [0], [1], [0, 0, 1, 1], [], []>} : vector<8x32xbf16>, vector<32x128xbf16>, vector<8x128xf32> -> vector<8x128xf32>
    %c0_30 = arith.constant 0 : index
    %c0_31 = arith.constant 0 : index
    %43 = vector.load %arg7[%c0_30, %c0_31] : memref<1x128xf32, #tpu.memory_space<vmem>>, vector<1x128xf32>
    %44 = vector.broadcast %43 : vector<1x128xf32> to vector<8x128xf32>
    %45 = arith.addf %42, %44 : vector<8x128xf32>
    %c0_32 = arith.constant 0 : index
    %c0_33 = arith.constant 0 : index
    %46 = vector.load %arg8[%c0_32, %c0_33] : memref<8x128xf32, #tpu.memory_space<vmem>>, vector<8x128xf32>
    tpu.vector_store %arg8[%c0_32, %c0_33], %45 {strides = array<i32>} : memref<8x128xf32, #tpu.memory_space<vmem>>, vector<8x128xf32>,
    return
  }
}

</mosaic_0001>

<bundles_post_ra>
// kernel: generator_forward.1
= control target key start
LH: loop header
LB: loop body
LE: loop exit
PB: predicated region body
PF: predicated region fallthrough
CT: control target
= control target key end

     0   :  { %15 = vsyncpa [#allocation3], 0  ;;  %v542_v2 = vmov 0   ;;  %v543_v3 = vmov 0.0   ;;  %vm60_vm0 = vcmask 1043456   ;;  %vm544_vm1 = vmmov 0   ;;  %s706_s0 = inlined_call_operand.vmem [shape: s32[8,1], index: 0, kind: input, shape index: {}]   ;;  %s707_s1 = inlined_call_operand.vmem [shape: bf16[24,32], index: 1, kind: input, shape index: {}]   ;;  %s708_s2 = inlined_call_operand.vmem [shape: f32[2,8,32], index: 2, kind: input, shape index: {}]   ;;  %s709_s3 = inlined_call_operand.vmem [shape: bf16[64,32], index: 3, kind: input, shape index: {}]   ;;  %s710_s4 = inlined_call_operand.vmem [shape: bf16[1,64,32], index: 4, kind: input, shape index: {}]   ;;  %s711_s5 = inlined_call_operand.vmem [shape: f32[2,1,32], index: 5, kind: input, shape index: {}]   ;;  %s712_s6 = inlined_call_operand.vmem [shape: bf16[32,128], index: 6, kind: input, shape index: {}]   ;;  %s713_s7 = inlined_call_operand.vmem [shape: f32[1,128], index: 7, kind: input, shape index: {}]   ;;  %s714_s8 = inlined_call_operand.hbm [shape: f32[8,128], index: 8, kind: output, shape index: {0}]   ;;  %s715_s9 = inlined_call_operand.hbm [shape: f32[2,8,32], index: 9, kind: output, shape index: {1}]  }
   0x1   :  { %v36_v0 = vld [vmem:[%s706_s0] sm:$0xff]  ;;  %477 = vset.pattern.permute.xlu0 %v542_v2  ;;  %429 = vmatprep.subr.bf16.mxu0 %v543_v3  ;;  %v479_v4 = vld [vmem:[%s707_s1 + $0x8] ss:$0 sps:$4 sm:$0xff]   ;;  %s545_s19 = smov 32  }
   0x2   :  { %v478_v1 = vld [vmem:[%s707_s1] sm:$0xff]   ;;  %38 = vperm.xlu0 %477, %v36_v0   ;;  %v62_v5 = vsel %vm60_vm0, %v479_v4, 0  ;;  %437 = vmatprep.subr.bf16.mxu1 %v543_v3  ;;  %v481_v9 = vld [vmem:[%s709_s3 + $0x8] sm:$0xff]  }
   0x3   :  { %430 = vmatpush3.bf16.msra.mxu0 %v478_v1  ;;  %433 = vmatprep.mubr.msk.bf16.mxu0 %vm544_vm1, %v543_v3  ;;  %v105_v6 = vld [vmem:[%s708_s2] sm:$0xff] }
   0x4   :  { %431 = vmatprep.subr.bf16.mxu0 %v543_v3  ;;  %445 = vmatprep.mubr.msk.bf16.mxu1 %vm544_vm1, %v543_v3  ;;  %v480_v7 = vld [vmem:[%s709_s3] sm:$0xff]   ;;  %v106_v8 = vpack.c.bf16 %v105_v6, %v105_v6 }
   0x5   :  { %438 = vmatpush3.bf16.msra.mxu1 %v480_v7 }
   0x6   :  { %108 = vrot.lane.b32.xlu0 %v106_v8, %s545_s19  ;;  %439 = vmatprep.subr.bf16.mxu1 %v543_v3 }
   0x7   :  { %432 = vmatpush3.bf16.msra.mxu0 %v62_v5 }
   0x8   :  { %449 = vmatprep.subr.bf16.mxu0 %v543_v3 }
   0x9   :  { %16 = vsyncpa [#allocation5], 0  ;;  %440 = vmatpush3.bf16.msra.mxu1 %v481_v9  ;;  %v482_v10 = vld [vmem:[%s709_s3 + $0x10] sm:$0xff]   ;;  %v34_v11 = vlaneseq  ;;  %vm56_vm3 = vcmask 195584   ;;  %v483_v16 = vld [vmem:[%s709_s3 + $0x18] sm:$0xff]   ;;  %vm110_vm4 = vcmask 261120  }
   0xa   :  { %441 = vmatprep.subr.bf16.mxu1 %v543_v3  ;;  %v401_v17 = vld [vmem:[%s708_s2 + $0x8] sm:$0xff]  ;;  %vm153_vm5 = vcmask 523264   ;;  %v484_v26 = vld [vmem:[%s710_s4] sm:$0xff]   ;;  %v486_v28 = vld [vmem:[%s710_s4 + $0x10] sm:$0xff]   ;;  %s546_s16 = smov [#allocation4]  }
   0xb   :  { %v35_v12 = vand.u32 127, %v34_v11  ;;  %v201_v18 = vpack.c.bf16 %v401_v17, %v401_v17  ;;  %v485_v27 = vld [vmem:[%s710_s4 + $0x8] sm:$0xff]   ;;  %v487_v29 = vld [vmem:[%s710_s4 + $0x18] sm:$0xff]   ;;  %v395_v30 = vld [vmem:[%s711_s5] ss:$0 sm:$0xff]  ;;  %s376_s17 = sshll.u32 %s546_s16, 4  ;;  %s377_s17 = int_to_ptr.vmem [resolvable:$true] %s376_s17 }
   0xc   :  { %v488_v40 = vld [vmem:[%s712_s6] sm:$0xff]   ;;  %v489_v41 = vld [vmem:[%s712_s6 + $0x8] sm:$0xff]   ;;  %s494_s6 = scalar_lea.vmem %s377_s17, 256  ;;  %p499_p1 = scmp.lt.s32.totalorder %s377_s17, %s377_s17 }
   0xd   :  { %442 = vmatpush3.bf16.msra.mxu1 %v482_v10  ;;  %203 = vrot.lane.b32.xlu1 %v201_v18, %s545_s19  ;;  %v403_v42 = vld [vmem:[%s711_s5 + $0x1] ss:$0 sm:$0xff]  ;;  %p495_p0 = scmp.ne.s32.totalorder %s377_s17, %s494_s6  ;;  %p500_p2 = scmp.lt.s32.totalorder %s494_s6, %s494_s6 }
   0xe   :  { %443 = vmatprep.subr.bf16.mxu1 %v543_v3 }
   0xf   :  { %p501_p3 = por %p500_p2, %p499_p1 }
  0x11   :  { %444 = vmatpush3.bf16.msra.mxu1 %v483_v16  ;;  %p502_p4 = pnand %p501_p3, %p495_p0 }
  0x12   :  { %461 = vmatprep.subr.bf16.mxu1 %v543_v3 }
  0x7f   :  { %v204_v37 = vpop.permute.xlu1 %203 }
  0x81   :  { %v39_v13 = vpop.permute.xlu0 %38 }
  0x82   :  { %vm40_vm2 = vcmp.eq.s32.totalorder %v39_v13, %v35_v12 }
  0x83   :  { %v391_v14 = vsel %vm40_vm2, 1.0, %v543_v3 }
  0x84   :  { %v43_v15 = vpack.c.bf16 %v391_v14, %v391_v14 }
  0x85   :  { %v109_v20 = vpop.permute.xlu0 %108 }
  0x86   :  { %434 = vmatmul.mubr.msk.bf16.vlgmr.msra.gmra.mrb[0].mxu0 %vm56_vm3, %v43_v15 }
  0x87   :  { %457 = vmatprep.mubr.msk.bf16.mxu0 %vm544_vm1, %v543_v3  ;;  %450 = vmatpush3.bf16.msra.mxu0 %v484_v26 }
  0x88   :  { %451 = vmatprep.subr.bf16.mxu0 %v543_v3 }
  0x8b   :  { %452 = vmatpush3.bf16.msra.mxu0 %v485_v27 }
  0x8c   :  { %453 = vmatprep.subr.bf16.mxu0 %v543_v3 }
  0x8f   :  { %454 = vmatpush3.bf16.msra.mxu0 %v486_v28 }
  0x90   :  { %455 = vmatprep.subr.bf16.mxu0 %v543_v3 }
  0x93   :  { %456 = vmatpush3.bf16.msra.mxu0 %v487_v29 }
 0x159   :  { %v98_v19 = vpop.f32.mrb[0].mxu0 }
 0x15a   :  { %v104_v21 = vpack.c.bf16 %v98_v19, %v98_v19  ;;  %v435_v22 = vpop.f32.mrb[1].mxu0 }
 0x15b   :  { %v101_v23 = vpop.f32.mrb[2].mxu0 }
 0x15c   :  { %v113_v24 = vsel %vm110_vm4, %v104_v21, %v109_v20  ;;  %v436_v25 = vpop.f32.mrb[3].mxu0 }
 0x15d   :  { %446 = vmatmul.mubr.msk.bf16.vlgmr.msra.gmra.mrb[0].mxu1 %vm153_vm5, %v113_v24 }
 0x15e   :  { %465 = vmatprep.mubr.msk.bf16.mxu1 %vm544_vm1, %v543_v3  ;;  %462 = vmatpush3.bf16.msra.mxu1 %v488_v40 }
 0x15f   :  { %463 = vmatprep.subr.bf16.mxu1 %v543_v3 }
 0x162   :  { %464 = vmatpush3.bf16.msra.mxu1 %v489_v41 }
 0x230   :  { %v190_v31 = vpop.f32.mrb[0].mxu1 }
 0x231   :  { %v191_v32 = vadd.f32 %v395_v30, %v190_v31  ;;  %v447_v33 = vpop.f32.mrb[1].mxu1 }
 0x232   :  { %v193_v34 = vpop.f32.mrb[2].mxu1 }
 0x233   :  { %490 = vtanh.f32 %v191_v32  ;;  %v448_v35 = vpop.f32.mrb[3].mxu1 }
 0x23d   :  { %v491_v36 = vpop.eup %490 }
 0x23e   :  { %197 = vst.msk [vmem:[#allocation4] sm:$0xff] %vm110_vm4, %v491_v36  ;;  %v198_v38 = vpack.c.bf16 %v491_v36, %v491_v36 }
 0x240   :  { %v207_v39 = vsel %vm110_vm4, %v198_v38, %v204_v37 }
 0x241   :  { %458 = vmatmul.mubr.msk.bf16.vlgmr.msra.gmra.mrb[4].mxu0 %vm153_vm5, %v207_v39 }
 0x314   :  { %v284_v43 = vpop.f32.mrb[4].mxu0 }
 0x315   :  { %v285_v44 = vadd.f32 %v403_v42, %v284_v43  ;;  %v459_v45 = vpop.f32.mrb[5].mxu0 }
 0x316   :  { %v287_v46 = vpop.f32.mrb[6].mxu0 }
 0x317   :  { %492 = vtanh.f32 %v285_v44  ;;  %v460_v47 = vpop.f32.mrb[7].mxu0 }
 0x321   :  { %v493_v48 = vpop.eup %492 }
 0x322   :  { %292 = vst.msk [vmem:[#allocation4 + $0x8] sm:$0xff] %vm110_vm4, %v493_v48  ;;  %v293_v49 = vpack.c.bf16 %v493_v48, %v493_v48 }
 0x324   :  { %466 = vmatmul.mubr.msk.bf16.vlgmr.msra.gmra.mrb[4].mxu1 %vm110_vm4, %v293_v49 }
 0x325   :  { %505 = shalt.err (!%p502_p4)
}
 0x326   :  { %s506_s19 = scalar_lea.hbm %s715_s9, 256 }
 0x327   :  { %p507_p5 = scmp.ne.s32.totalorder %s715_s9, %s506_s19  ;;  %p510_p6 = scmp.lt.u32.totalorder %s506_s19, %s715_s9 }
 0x329   :  { %p512_p7 = pnand %p510_p6, %p507_p5 }
 0x32b   :  { %515 = shalt.err (!%p512_p7)
}
 0x32c   :  { %s547_s24 = smov 128   ;;  %s548_s25 = smov 8   ;;  %v409_v50 = vld [vmem:[%s713_s7] ss:$0 sm:$0xff] }
 0x32d   :  { %382 = dma.vmem_to_hbm [thread:$0]  %s377_s17, 256, %s715_s9, [#allocation5], %s547_s24, %s547_s24, %s548_s25  }
 0x32e   :  { %s549_s28 = smov [#allocation2]  }
 0x32f   :  { %s367_s29 = sshll.u32 %s549_s28, 4  ;;  %s368_s29 = int_to_ptr.vmem [resolvable:$true] %s367_s29 }
 0x330   :  { %s516_s30 = scalar_lea.vmem %s368_s29, 128  ;;  %p521_p9 = scmp.lt.s32.totalorder %s368_s29, %s368_s29 }
 0x331   :  { %p517_p8 = scmp.ne.s32.totalorder %s368_s29, %s516_s30  ;;  %p522_p10 = scmp.lt.s32.totalorder %s516_s30, %s516_s30 }
 0x333   :  { %p523_p11 = por %p522_p10, %p521_p9 }
 0x335   :  { %p524_p12 = pnand %p523_p11, %p517_p8 }
 0x3f7   :  { %v354_v51 = vpop.f32.mrb[4].mxu1 }
 0x3f8   :  { %v355_v52 = vadd.f32 %v409_v50, %v354_v51  ;;  %v467_v53 = vpop.f32.mrb[5].mxu1 }
 0x3f9   :  { %v357_v54 = vpop.f32.mrb[6].mxu1 }
 0x3fa   :  { %360 = vst [vmem:[#allocation2] sm:$0xff] %v355_v52  ;;  %v468_v55 = vpop.f32.mrb[7].mxu1 }
 0x3fb   :  { %527 = shalt.err (!%p524_p12)
}
 0x3fc   :  { %s528_s7 = scalar_lea.hbm %s714_s8, 128 }
 0x3fd   :  { %p529_p13 = scmp.ne.s32.totalorder %s714_s8, %s528_s7  ;;  %p532_p0 = scmp.lt.u32.totalorder %s528_s7, %s714_s8 }
 0x3ff   :  { %p534_p1 = pnand %p532_p0, %p529_p13 }
 0x401   :  { %537 = shalt.err (!%p534_p1)
}
 0x402   :  { %370 = dma.vmem_to_hbm [thread:$0]  %s368_s29, 128, %s714_s8, [#allocation3]  }
 0x403   :  { %538 = dma.done.wait [#allocation3], 128  }
 0x404   :  { %539 = vsyncadd [#allocation3], 4294967168 }
 0x405   :  { %540 = dma.done.wait [#allocation5], 256  }
 0x406   :  { %541 = vsyncadd [#allocation5], 4294967040 }
 0x407   :  { %389 = vsyncpa [#allocation3], 1 }
 0x408   :  { %390 = vsyncpa [#allocation5], 1 }

</bundles_post_ra>
